<compile_context>
chip_gen: v6e
topology: v6e:2x2x1
jax: 0.10.0
libtpu: 0.0.40
codegen_flags: <defaults>
</compile_context>

<pallas_src>
import functools

import jax
import jax.numpy as jnp
from jax import lax
from jax.experimental import pallas as pl
from jax.experimental.pallas import tpu as pltpu


def _round_up(x, m):
    return ((x + m - 1) // m) * m


def spi_kernel(x_ref, p_ref, pt_ref, w_ref, o_ref, *, inv_base):
    # x_ref : (tile_n, P_pad)  bf16   row tile of flattened images
    # p_ref : (P_pad,  B_pad)  bf16   measurement basis (resident)
    # pt_ref: (B_pad,  P_pad)  bf16   precomputed transpose (resident)
    # w_ref : (1,      B_pad)  f32    sum(params,0)/mean(sum(params,0))
    x = x_ref[...]
    p = p_ref[...]
    pt = pt_ref[...]
    w = w_ref[...]

    # i = x @ params     (tile_n, B_pad), f32 accumulation on the MXU.
    i = lax.dot_general(
        x, p, (((1,), (0,)), ((), ())), preferred_element_type=jnp.float32
    )

    # Correction on the SMALL (tile_n, B) tensor, in f32.
    # row mean over the TRUE base_nums columns (padded columns of i are 0).
    row_mean = jnp.sum(i, axis=1, keepdims=True) * inv_base
    corr = ((i - row_mean * w) * inv_base).astype(pt.dtype)

    # out = corr @ params.T  (canonical contraction on the precomputed pt).
    out = lax.dot_general(
        corr, pt, (((1,), (0,)), ((), ())), preferred_element_type=jnp.float32
    )
    o_ref[...] = out.astype(o_ref.dtype)


def spi_forward(x, params, *, img_size, base_nums, out_dtype=jnp.float32):
    p_dim, b_dim = params.shape
    params_f32 = params.astype(jnp.float32)
    x_flat = jnp.reshape(x, (-1, p_dim)).astype(jnp.float32)
    n = x_flat.shape[0]

    # Hoisted params-only reductions (exact f32, computed once by XLA).
    s = jnp.sum(params_f32, axis=0, keepdims=True)        # (1, B)
    w = s / jnp.mean(s)                                    # (1, B)

    # Lane padding (exact: padded rows/cols of params are zero, row means
    # divide by the true base_nums, padded columns of w are zero).
    p_pad = _round_up(p_dim, 128)
    b_pad = _round_up(b_dim, 128)

    # Batch tiling: pad rows only to a sublane multiple; partial last block
    # is clipped by Pallas, so no dead-row writeback.
    n8 = _round_up(max(n, 1), 8)
    if n8 >= 512:
        tile_n = 256                                   # fills 2x256x256 MXU
    elif n8 >= 16:
        tile_n = _round_up(pl.cdiv(n8, 2), 8)          # >=2 tiles -> both TCs
    else:
        tile_n = n8
    num_tiles = pl.cdiv(n8, tile_n)

    x_flat = jnp.pad(x_flat, ((0, n8 - n), (0, p_pad - p_dim)))
    params_pad = jnp.pad(params_f32, ((0, p_pad - p_dim), (0, b_pad - b_dim)))
    w = jnp.pad(w, ((0, 0), (0, b_pad - b_dim)))

    # bf16 MXU operands; transpose precomputed once in the wrapper.
    x_bf = x_flat.astype(jnp.bfloat16)
    p_bf = params_pad.astype(jnp.bfloat16)
    pt_bf = p_bf.T

    # Explicit VMEM budget (2x buffers for pipelined x/out, residents counted
    # double-buffered as the worst case) + headroom.
    o_bytes = jnp.dtype(out_dtype).itemsize
    x_buf = tile_n * p_pad * 2
    o_buf = tile_n * p_pad * o_bytes
    p_buf = p_pad * b_pad * 2
    w_buf = 8 * b_pad * 4
    need = 2 * x_buf + 2 * o_buf + 4 * p_buf + 2 * w_buf
    vmem_limit = int(min(max(need * 3 // 2 + (1 << 20), 16 << 20), 100 << 20))

    cost = pl.CostEstimate(
        flops=4 * n8 * p_pad * b_pad,                      # two matmuls
        transcendentals=0,
        bytes_accessed=n8 * p_pad * (2 + o_bytes) + 2 * p_pad * b_pad * 2
        + b_pad * 4,
    )

    kernel = functools.partial(spi_kernel, inv_base=1.0 / float(base_nums))

    def build(single_buffer_residents):
        res = (
            dict(pipeline_mode=pl.Buffered(1)) if single_buffer_residents else {}
        )
        in_specs = [
            pl.BlockSpec((tile_n, p_pad), lambda i: (i, 0)),          # x tiles
            pl.BlockSpec((p_pad, b_pad), lambda i: (0, 0), **res),    # params
            pl.BlockSpec((b_pad, p_pad), lambda i: (0, 0), **res),    # params.T
            pl.BlockSpec((1, b_pad), lambda i: (0, 0), **res),        # w
        ]
        return pl.pallas_call(
            kernel,
            out_shape=jax.ShapeDtypeStruct((n8, p_pad), out_dtype),
            grid=(num_tiles,),
            in_specs=in_specs,
            out_specs=pl.BlockSpec((tile_n, p_pad), lambda i: (i, 0)),
            compiler_params=pltpu.CompilerParams(
                dimension_semantics=("parallel",),
                vmem_limit_bytes=vmem_limit,
            ),
            cost_estimate=cost,
        )

    try:
        # Preferred: single-buffered resident params / params.T / w.
        out_flat = jax.block_until_ready(build(True)(x_bf, p_bf, pt_bf, w))
    except Exception:
        # Fallback if this JAX build rejects Buffered(1) on pallas_call.
        out_flat = build(False)(x_bf, p_bf, pt_bf, w)

    return out_flat[:n, :p_dim].reshape(n, img_size, img_size)


def spi_reference(x, params, *, img_size, base_nums):
    # Pure-JAX f32 reference mirroring the PyTorch forward exactly.
    img_pixels = params.shape[0]
    xf = jnp.reshape(x, (-1, img_pixels)).astype(jnp.float32)
    params = params.astype(jnp.float32)
    i = xf @ params
    s = jnp.sum(params, axis=0)
    out = (1.0 / base_nums) * (i @ params.T) - (
        jnp.mean(i, axis=1, keepdims=True) / jnp.mean(s)
    ) @ ((1.0 / base_nums) * (s[None, :] @ params.T))
    return out.reshape(-1, img_size, img_size)


if __name__ == "__main__":
    # Small shapes consistent with the module: img_size=16 -> img_pixels=256.
    img_size = 16
    img_pixels = img_size * img_size   # 256
    base_nums = 128
    batch = 2

    key = jax.random.PRNGKey(0)
    kx, kp = jax.random.split(key)
    x = jax.random.normal(kx, (batch, img_size, img_size), dtype=jnp.float32)
    params = jax.random.normal(kp, (img_pixels, base_nums), dtype=jnp.float32)

    out = spi_forward(x, params, img_size=img_size, base_nums=base_nums)
    out = jax.block_until_ready(out)

    ref = spi_reference(x, params, img_size=img_size, base_nums=base_nums)
    assert out.shape == (batch, img_size, img_size)

    # bf16 MXU operands + fused/reassociated math -> relaxed, scale-aware check.
    err = float(jnp.max(jnp.abs(out - ref)))
    scale = float(jnp.max(jnp.abs(ref))) + 1e-6
    assert err <= 3e-2 * scale + 1e-3, f"mismatch: max|err|={err}, max|ref|={scale}"

    print("KERNEL_OK")
</pallas_src>

<mosaic_0001>
module attributes {stable_mosaic.version = 11 : i64} {
  func.func @spi_kernel(%arg0: i32, %arg1: memref<8x256xbf16, #tpu.memory_space<vmem>>, %arg2: memref<256x128xbf16, #tpu.memory_space<vmem>>, %arg3: memref<128x256xbf16, #tpu.memory_space<vmem>>, %arg4: memref<1x128xf32, #tpu.memory_space<vmem>>, %arg5: memref<8x256xf32, #tpu.memory_space<vmem>>) attributes {dimension_semantics = [#tpu.dimension_semantics<parallel>], iteration_bounds = array<i64: 1>, scalar_prefetch = 0 : i64, scratch_operands = 0 : i64, tpu.core_type = #tpu.core_type<tc>, window_params = [{transform_indices = @transform_0, window_bounds = array<i64: 8, 256>}, {pipeline_mode = #tpu.pipeline_mode<synchronous>, transform_indices = @transform_1, window_bounds = array<i64: 256, 128>}, {pipeline_mode = #tpu.pipeline_mode<synchronous>, transform_indices = @transform_2, window_bounds = array<i64: 128, 256>}, {pipeline_mode = #tpu.pipeline_mode<synchronous>, transform_indices = @transform_3, window_bounds = array<i64: 1, 128>}, {transform_indices = @transform_4, window_bounds = array<i64: 8, 256>}]} {
    %c0 = arith.constant 0 : index
    %c0_0 = arith.constant 0 : index
    %0 = vector.load %arg1[%c0, %c0_0] : memref<8x256xbf16, #tpu.memory_space<vmem>>, vector<8x256xbf16>
    %c0_1 = arith.constant 0 : index
    %c0_2 = arith.constant 0 : index
    %1 = vector.load %arg2[%c0_1, %c0_2] : memref<256x128xbf16, #tpu.memory_space<vmem>>, vector<256x128xbf16>
    %c0_3 = arith.constant 0 : index
    %c0_4 = arith.constant 0 : index
    %2 = vector.load %arg3[%c0_3, %c0_4] : memref<128x256xbf16, #tpu.memory_space<vmem>>, vector<128x256xbf16>
    %c0_5 = arith.constant 0 : index
    %c0_6 = arith.constant 0 : index
    %3 = vector.load %arg4[%c0_5, %c0_6] : memref<1x128xf32, #tpu.memory_space<vmem>>, vector<1x128xf32>
    %cst = arith.constant dense<0.000000e+00> : vector<8x128xf32>
    %4 = tpu.matmul %0, %1, %cst {dimension_numbers = #tpu.dot_dimension_numbers<[1], [0], [0], [1], [0, 0, 1, 1], [], []>} : vector<8x256xbf16>, vector<256x128xbf16>, vector<8x128xf32> -> vector<8x128xf32>
    %cst_7 = arith.constant dense<0.000000e+00> : vector<8xf32>
    %5 = vector.multi_reduction <add>, %4, %cst_7 [1] : vector<8x128xf32> to vector<8xf32>
    %6 = vector.shape_cast %5 : vector<8xf32> to vector<8x1xf32>
    %cst_8 = arith.constant 7.812500e-03 : f32
    %7 = vector.broadcast %cst_8 : f32 to vector<8x1xf32>
    %8 = arith.mulf %6, %7 : vector<8x1xf32>
    %9 = vector.broadcast %8 : vector<8x1xf32> to vector<8x128xf32>
    %10 = vector.broadcast %3 : vector<1x128xf32> to vector<8x128xf32>
    %11 = arith.mulf %9, %10 : vector<8x128xf32>
    %12 = arith.subf %4, %11 : vector<8x128xf32>
    %cst_9 = arith.constant 7.812500e-03 : f32
    %13 = vector.broadcast %cst_9 : f32 to vector<8x128xf32>
    %14 = arith.mulf %12, %13 : vector<8x128xf32>
    %15 = arith.truncf %14 : vector<8x128xf32> to vector<8x128xbf16>
    %cst_10 = arith.constant dense<0.000000e+00> : vector<8x256xf32>
    %16 = tpu.matmul %15, %2, %cst_10 {dimension_numbers = #tpu.dot_dimension_numbers<[1], [0], [0], [1], [0, 0, 1, 1], [], []>} : vector<8x128xbf16>, vector<128x256xbf16>, vector<8x256xf32> -> vector<8x256xf32>
    %c0_11 = arith.constant 0 : index
    %c0_12 = arith.constant 0 : index
    %17 = vector.load %arg5[%c0_11, %c0_12] : memref<8x256xf32, #tpu.memory_space<vmem>>, vector<8x256xf32>
    tpu.vector_store %arg5[%c0_11, %c0_12], %16 {strides = array<i32>} : memref<8x256xf32, #tpu.memory_space<vmem>>, vector<8x256xf32>,
    return
  }
  func.func @transform_0(%arg0: i32) -> (i32, i32) {
    %c0_i32 = arith.constant 0 : i32
    %c0_i32_0 = arith.constant 0 : i32
    return %arg0, %c0_i32 : i32, i32
  }
  func.func @transform_1(%arg0: i32) -> (i32, i32) {
    %c0_i32 = arith.constant 0 : i32
    %c0_i32_0 = arith.constant 0 : i32
    %c0_i32_1 = arith.constant 0 : i32
    return %c0_i32, %c0_i32_0 : i32, i32
  }
  func.func @transform_2(%arg0: i32) -> (i32, i32) {
    %c0_i32 = arith.constant 0 : i32
    %c0_i32_0 = arith.constant 0 : i32
    %c0_i32_1 = arith.constant 0 : i32
    return %c0_i32, %c0_i32_0 : i32, i32
  }
  func.func @transform_3(%arg0: i32) -> (i32, i32) {
    %c0_i32 = arith.constant 0 : i32
    %c0_i32_0 = arith.constant 0 : i32
    %c0_i32_1 = arith.constant 0 : i32
    return %c0_i32, %c0_i32_0 : i32, i32
  }
  func.func @transform_4(%arg0: i32) -> (i32, i32) {
    %c0_i32 = arith.constant 0 : i32
    %c0_i32_0 = arith.constant 0 : i32
    return %arg0, %c0_i32 : i32, i32
  }
}

module attributes {stable_mosaic.version = 11 : i64} {
  func.func @spi_kernel(%arg0: i32, %arg1: memref<8x256xbf16, #tpu.memory_space<vmem>>, %arg2: memref<256x128xbf16, #tpu.memory_space<vmem>>, %arg3: memref<128x256xbf16, #tpu.memory_space<vmem>>, %arg4: memref<1x128xf32, #tpu.memory_space<vmem>>, %arg5: memref<8x256xf32, #tpu.memory_space<vmem>>) attributes {dimension_semantics = [#tpu.dimension_semantics<parallel>], iteration_bounds = array<i64: 1>, scalar_prefetch = 0 : i64, scratch_operands = 0 : i64, tpu.core_type = #tpu.core_type<tc>, window_params = [{transform_indices = @transform_0, window_bounds = array<i64: 8, 256>}, {pipeline_mode = #tpu.pipeline_mode<synchronous>, transform_indices = @transform_1, window_bounds = array<i64: 256, 128>}, {pipeline_mode = #tpu.pipeline_mode<synchronous>, transform_indices = @transform_2, window_bounds = array<i64: 128, 256>}, {pipeline_mode = #tpu.pipeline_mode<synchronous>, transform_indices = @transform_3, window_bounds = array<i64: 1, 128>}, {transform_indices = @transform_4, window_bounds = array<i64: 8, 256>}]} {
    %c0 = arith.constant 0 : index
    %c0_0 = arith.constant 0 : index
    %0 = vector.load %arg1[%c0, %c0_0] : memref<8x256xbf16, #tpu.memory_space<vmem>>, vector<8x256xbf16>
    %c0_1 = arith.constant 0 : index
    %c0_2 = arith.constant 0 : index
    %1 = vector.load %arg2[%c0_1, %c0_2] : memref<256x128xbf16, #tpu.memory_space<vmem>>, vector<256x128xbf16>
    %c0_3 = arith.constant 0 : index
    %c0_4 = arith.constant 0 : index
    %2 = vector.load %arg3[%c0_3, %c0_4] : memref<128x256xbf16, #tpu.memory_space<vmem>>, vector<128x256xbf16>
    %c0_5 = arith.constant 0 : index
    %c0_6 = arith.constant 0 : index
    %3 = vector.load %arg4[%c0_5, %c0_6] : memref<1x128xf32, #tpu.memory_space<vmem>>, vector<1x128xf32>
    %cst = arith.constant dense<0.000000e+00> : vector<8x128xf32>
    %4 = tpu.matmul %0, %1, %cst {dimension_numbers = #tpu.dot_dimension_numbers<[1], [0], [0], [1], [0, 0, 1, 1], [], []>} : vector<8x256xbf16>, vector<256x128xbf16>, vector<8x128xf32> -> vector<8x128xf32>
    %cst_7 = arith.constant dense<0.000000e+00> : vector<8xf32>
    %5 = vector.multi_reduction <add>, %4, %cst_7 [1] : vector<8x128xf32> to vector<8xf32>
    %6 = vector.shape_cast %5 : vector<8xf32> to vector<8x1xf32>
    %cst_8 = arith.constant 7.812500e-03 : f32
    %7 = vector.broadcast %cst_8 : f32 to vector<8x1xf32>
    %8 = arith.mulf %6, %7 : vector<8x1xf32>
    %9 = vector.broadcast %8 : vector<8x1xf32> to vector<8x128xf32>
    %10 = vector.broadcast %3 : vector<1x128xf32> to vector<8x128xf32>
    %11 = arith.mulf %9, %10 : vector<8x128xf32>
    %12 = arith.subf %4, %11 : vector<8x128xf32>
    %cst_9 = arith.constant 7.812500e-03 : f32
    %13 = vector.broadcast %cst_9 : f32 to vector<8x128xf32>
    %14 = arith.mulf %12, %13 : vector<8x128xf32>
    %15 = arith.truncf %14 : vector<8x128xf32> to vector<8x128xbf16>
    %cst_10 = arith.constant dense<0.000000e+00> : vector<8x256xf32>
    %16 = tpu.matmul %15, %2, %cst_10 {dimension_numbers = #tpu.dot_dimension_numbers<[1], [0], [0], [1], [0, 0, 1, 1], [], []>} : vector<8x128xbf16>, vector<128x256xbf16>, vector<8x256xf32> -> vector<8x256xf32>
    %c0_11 = arith.constant 0 : index
    %c0_12 = arith.constant 0 : index
    %17 = vector.load %arg5[%c0_11, %c0_12] : memref<8x256xf32, #tpu.memory_space<vmem>>, vector<8x256xf32>
    tpu.vector_store %arg5[%c0_11, %c0_12], %16 {strides = array<i32>} : memref<8x256xf32, #tpu.memory_space<vmem>>, vector<8x256xf32>,
    return
  }
  func.func @transform_0(%arg0: i32) -> (i32, i32) {
    %c0_i32 = arith.constant 0 : i32
    %c0_i32_0 = arith.constant 0 : i32
    return %arg0, %c0_i32 : i32, i32
  }
  func.func @transform_1(%arg0: i32) -> (i32, i32) {
    %c0_i32 = arith.constant 0 : i32
    %c0_i32_0 = arith.constant 0 : i32
    %c0_i32_1 = arith.constant 0 : i32
    return %c0_i32, %c0_i32_0 : i32, i32
  }
  func.func @transform_2(%arg0: i32) -> (i32, i32) {
    %c0_i32 = arith.constant 0 : i32
    %c0_i32_0 = arith.constant 0 : i32
    %c0_i32_1 = arith.constant 0 : i32
    return %c0_i32, %c0_i32_0 : i32, i32
  }
  func.func @transform_3(%arg0: i32) -> (i32, i32) {
    %c0_i32 = arith.constant 0 : i32
    %c0_i32_0 = arith.constant 0 : i32
    %c0_i32_1 = arith.constant 0 : i32
    return %c0_i32, %c0_i32_0 : i32, i32
  }
  func.func @transform_4(%arg0: i32) -> (i32, i32) {
    %c0_i32 = arith.constant 0 : i32
    %c0_i32_0 = arith.constant 0 : i32
    return %arg0, %c0_i32 : i32, i32
  }
}

</mosaic_0001>

<bundles_post_ra>
// kernel: tpu_custom_call.1
= control target key start
LH: loop header
LB: loop body
LE: loop exit
PB: predicated region body
PF: predicated region fallthrough
CT: control target
= control target key end

     0   :  { %9 = vsyncpa [#allocation3], 0  ;;  %s646_s0 = inlined_call_operand.hbm [shape: bf16[8,256], index: 0, kind: input, shape index: {}]   ;;  %s647_s1 = inlined_call_operand.hbm [shape: bf16[256,128], index: 1, kind: input, shape index: {}]   ;;  %s648_s2 = inlined_call_operand.hbm [shape: bf16[128,256], index: 2, kind: input, shape index: {}]   ;;  %s649_s3 = inlined_call_operand.vmem [shape: f32[1,128], index: 3, kind: input, shape index: {}]   ;;  %s650_s4 = inlined_call_operand.hbm [shape: f32[8,256], index: 4, kind: output, shape index: {}]  }
   0x1   :  { %10 = vsyncpa [#allocation6], 0 }
   0x2   :  { %11 = vsyncpa [#allocation4], 0  ;;  %s597_s15 = smov [#allocation5]  }
   0x3   :  { %s27_s16 = sshll.u32 %s597_s15, 4  ;;  %s28_s16 = int_to_ptr.vmem [resolvable:$true] %s27_s16 }
   0x4   :  { %s519_s17 = scalar_lea.vmem %s28_s16, 2048  ;;  %p524_p1 = scmp.lt.s32.totalorder %s28_s16, %s28_s16 }
   0x5   :  { %p520_p0 = scmp.ne.s32.totalorder %s28_s16, %s519_s17  ;;  %p525_p2 = scmp.lt.s32.totalorder %s519_s17, %s519_s17 }
   0x7   :  { %p526_p3 = por %p525_p2, %p524_p1 }
   0x9   :  { %p527_p4 = pnand %p526_p3, %p520_p0 }
   0xb   :  { %530 = shalt.err (!%p527_p4)
}
   0xc   :  { %s598_s18 = smov 64   ;;  %s599_s19 = smov 4  }
   0xd   :  { %33 = dma.hbm_to_vmem [thread:$0]  %s647_s1, 2048, %s28_s16, [#allocation6], %s598_s18, %s598_s18, %s599_s19  }
   0xe   :  { %s600_s22 = smov [#allocation2]   ;;  %s601_s24 = smov [#allocation7]  }
   0xf   :  { %s18_s23 = sshll.u32 %s600_s22, 4  ;;  %s39_s25 = sshll.u32 %s601_s24, 4  ;;  %s19_s23 = int_to_ptr.vmem [resolvable:$true] %s18_s23  ;;  %s40_s25 = int_to_ptr.vmem [resolvable:$true] %s39_s25 }
  0x10   :  { %s539_s26 = scalar_lea.vmem %s19_s23, 128  ;;  %p544_p6 = scmp.lt.s32.totalorder %s19_s23, %s19_s23 }
  0x11   :  { %p540_p5 = scmp.ne.s32.totalorder %s19_s23, %s539_s26  ;;  %p545_p7 = scmp.lt.s32.totalorder %s539_s26, %s539_s26 }
  0x13   :  { %p546_p8 = por %p545_p7, %p544_p6 }
  0x15   :  { %p547_p9 = pnand %p546_p8, %p540_p5 }
  0x17   :  { %550 = shalt.err (!%p547_p9)
}
  0x18   :  { %21 = dma.hbm_to_vmem [thread:$0]  %s646_s0, 128, %s19_s23, [#allocation3]  }
  0x19   :  { %s559_s29 = scalar_lea.vmem %s40_s25, 2048  ;;  %p564_p11 = scmp.lt.s32.totalorder %s40_s25, %s40_s25 }
  0x1a   :  { %p560_p10 = scmp.ne.s32.totalorder %s40_s25, %s559_s29  ;;  %p565_p12 = scmp.lt.s32.totalorder %s559_s29, %s559_s29 }
  0x1c   :  { %p566_p13 = por %p565_p12, %p564_p11 }
  0x1e   :  { %p567_p0 = pnand %p566_p13, %p560_p10 }
  0x20   :  { %570 = shalt.err (!%p567_p0)
}
  0x21   :  { %s602_s1 = smov 128   ;;  %s603_s30 = smov 8  }
  0x22   :  { %45 = dma.hbm_to_vmem [thread:$0]  %s648_s2, 2048, %s40_s25, [#allocation6], %s602_s1, %s602_s1, %s603_s30  }
  0x23   :  { %591 = dma.done.wait [#allocation3], 128  }
  0x24   :  { %592 = vsyncadd [#allocation3], 4294967168 }
  0x25   :  { %593 = dma.done.wait [#allocation6], 4096  }
  0x26   :  { %594 = vsyncadd [#allocation6], 4294963200  ;;  %v469_v0 = vld [vmem:[#allocation5 + $0x78] sm:$0xff]   ;;  %v471_v2 = vld [vmem:[#allocation5 + $0x70] sm:$0xff]   ;;  %v604_v40 = vmov 0   ;;  %s605_s7 = smov [#allocation8]  }
  0x27   :  { %v470_v1 = vld [vmem:[#allocation5 + $0x38] sm:$0xff]   ;;  %438 = vmatprep.subr.bf16.mxu0 %v469_v0  ;;  %v472_v3 = vld [vmem:[#allocation5 + $0x30] sm:$0xff]   ;;  %v473_v4 = vld [vmem:[#allocation5 + $0x68] sm:$0xff]   ;;  %376 = vmatprep.mubr.bf16.mxu1 %v604_v40  ;;  %s393_s8 = sshll.u32 %s605_s7, 4  ;;  %s394_s8 = int_to_ptr.vmem [resolvable:$true] %s393_s8 }
  0x28   :  { %439 = vmatpush3.bf16.msra.mxu0 %v470_v1  ;;  %v474_v5 = vld [vmem:[#allocation5 + $0x28] sm:$0xff]   ;;  %v475_v6 = vld [vmem:[#allocation5 + $0x60] sm:$0xff]   ;;  %v477_v8 = vld [vmem:[#allocation5 + $0x58] sm:$0xff]   ;;  %s571_s9 = scalar_lea.vmem %s394_s8, 256  ;;  %p576_p2 = scmp.lt.s32.totalorder %s394_s8, %s394_s8 }
  0x29   :  { %440 = vmatprep.subr.bf16.mxu0 %v471_v2  ;;  %v476_v7 = vld [vmem:[#allocation5 + $0x20] sm:$0xff]   ;;  %v478_v9 = vld [vmem:[#allocation5 + $0x18] sm:$0xff]   ;;  %v479_v10 = vld [vmem:[#allocation5 + $0x50] sm:$0xff]   ;;  %p572_p1 = scmp.ne.s32.totalorder %s394_s8, %s571_s9  ;;  %p577_p3 = scmp.lt.s32.totalorder %s571_s9, %s571_s9 }
  0x2a   :  { %v58_v11 = vld [vmem:[#allocation2] sm:$0xff]  ;;  %v480_v12 = vld [vmem:[#allocation5 + $0x10] sm:$0xff]   ;;  %v481_v14 = vld [vmem:[#allocation5 + $0x48] sm:$0xff]  }
  0x2b   :  { %v404_v13 = vcombine.high %v58_v11, %v58_v11  ;;  %v482_v15 = vld [vmem:[#allocation5 + $0x8] sm:$0xff]   ;;  %v483_v16 = vld [vmem:[#allocation5 + $0x40] sm:$0xff]   ;;  %v403_v18 = vcombine.low %v58_v11, %v58_v11  ;;  %v487_v19 = vld [vmem:[#allocation7 + $0x74] ss:$8 sps:$4 sm:$0xff]   ;;  %p578_p4 = por %p577_p3, %p576_p2 }
  0x2c   :  { %441 = vmatpush3.bf16.msra.mxu0 %v472_v3  ;;  %v484_v17 = vld [vmem:[#allocation5] sm:$0xff]   ;;  %v489_v20 = vld [vmem:[#allocation7 + $0x70] ss:$8 sps:$4 sm:$0xff]   ;;  %344 = vmatprep.subr.bf16.mxu1 %v487_v19  ;;  %v493_v23 = vld [vmem:[#allocation7 + $0x54] ss:$8 sps:$4 sm:$0xff]  }
  0x2d   :  { %442 = vmatprep.subr.bf16.mxu0 %v473_v4  ;;  %243 = vmatprep.mubr.bf16.mxu0 %v404_v13  ;;  %v490_v21 = vld [vmem:[#allocation7 + $0x64] ss:$8 sps:$4 sm:$0xff]   ;;  %v492_v22 = vld [vmem:[#allocation7 + $0x60] ss:$8 sps:$4 sm:$0xff]   ;;  %v495_v24 = vld [vmem:[#allocation7 + $0x50] ss:$8 sps:$4 sm:$0xff]   ;;  %p579_p5 = pnand %p578_p4, %p572_p1 }
  0x2e   :  { %345 = vmatpush1.bf16.msra.mxu1 %v489_v20  ;;  %v496_v25 = vld [vmem:[#allocation7 + $0x44] ss:$8 sps:$4 sm:$0xff]   ;;  %v498_v26 = vld [vmem:[#allocation7 + $0x40] ss:$8 sps:$4 sm:$0xff]   ;;  %v499_v27 = vld [vmem:[#allocation7 + $0x34] ss:$8 sps:$4 sm:$0xff]  }
  0x2f   :  { %346 = vmatprep.subr.bf16.mxu1 %v490_v21  ;;  %v501_v28 = vld [vmem:[#allocation7 + $0x30] ss:$8 sps:$4 sm:$0xff]   ;;  %v502_v29 = vld [vmem:[#allocation7 + $0x24] ss:$8 sps:$4 sm:$0xff]   ;;  %v504_v35 = vld [vmem:[#allocation7 + $0x20] ss:$8 sps:$4 sm:$0xff]  }
  0x30   :  { %443 = vmatpush3.bf16.msra.mxu0 %v474_v5  ;;  %v505_v36 = vld [vmem:[#allocation7 + $0x14] ss:$8 sps:$4 sm:$0xff]   ;;  %v507_v37 = vld [vmem:[#allocation7 + $0x10] ss:$8 sps:$4 sm:$0xff]   ;;  %v508_v38 = vld [vmem:[#allocation7 + $0x4] ss:$8 sps:$4 sm:$0xff]  }
  0x31   :  { %444 = vmatprep.subr.bf16.mxu0 %v475_v6  ;;  %v510_v39 = vld [vmem:[#allocation7] ss:$8 sps:$4 sm:$0xff]   ;;  %v421_v41 = vld [vmem:[%s649_s3] ss:$0 sm:$0xff] }
  0x32   :  { %347 = vmatpush1.bf16.msra.mxu1 %v492_v22 }
  0x33   :  { %348 = vmatprep.subr.bf16.mxu1 %v493_v23 }
  0x34   :  { %445 = vmatpush3.bf16.msra.mxu0 %v476_v7 }
  0x35   :  { %446 = vmatprep.subr.bf16.mxu0 %v477_v8 }
  0x36   :  { %349 = vmatpush1.bf16.msra.mxu1 %v495_v24 }
  0x37   :  { %350 = vmatprep.subr.bf16.mxu1 %v496_v25 }
  0x38   :  { %447 = vmatpush3.bf16.msra.mxu0 %v478_v9 }
  0x39   :  { %448 = vmatprep.subr.bf16.mxu0 %v479_v10 }
  0x3a   :  { %351 = vmatpush1.bf16.msra.mxu1 %v498_v26 }
  0x3b   :  { %352 = vmatprep.subr.bf16.mxu1 %v499_v27 }
  0x3c   :  { %449 = vmatpush3.bf16.msra.mxu0 %v480_v12 }
  0x3d   :  { %450 = vmatprep.subr.bf16.mxu0 %v481_v14 }
  0x3e   :  { %353 = vmatpush1.bf16.msra.mxu1 %v501_v28 }
  0x3f   :  { %354 = vmatprep.subr.bf16.mxu1 %v502_v29 }
  0x40   :  { %451 = vmatpush3.bf16.msra.mxu0 %v482_v15 }
  0x41   :  { %452 = vmatprep.subr.bf16.mxu0 %v483_v16 }
  0x42   :  { %355 = vmatpush1.bf16.msra.mxu1 %v504_v35 }
  0x43   :  { %356 = vmatprep.subr.bf16.mxu1 %v505_v36 }
  0x44   :  { %453 = vmatpush3.bf16.msra.mxu0 %v484_v17 }
  0x46   :  { %357 = vmatpush1.bf16.msra.mxu1 %v507_v37 }
  0x47   :  { %244 = vmatmul.mubr.bf16.vlgmr.msra.gmra.mxu0 %v403_v18  ;;  %358 = vmatprep.subr.bf16.mxu1 %v508_v38 }
  0x4a   :  { %359 = vmatpush1.bf16.msra.mxu1 %v510_v39 }
 0x107   :  { %v454_v30 = vpop.f32.mrf.mxu0 }
 0x109   :  { %v455_v31 = vpop.f32.mrf.mxu0 }
 0x10a   :  { %v456_v32 = vadd.f32 %v455_v31, %v454_v30 }
 0x10b   :  { %v457_v33 = vpop.f32.mrf.mxu0 }
 0x10c   :  { %251 = vadd.xlane.f32.xlu0 %v456_v32 }
 0x10d   :  { %v458_v34 = vpop.f32.mrf.mxu0 }
 0x195   :  { %v252_v42 = vpop.xlane.xlu0 %251 }
 0x196   :  { %v253_v43 = vmul.f32 0.0078125, %v252_v42 }
 0x198   :  { %v260_v44 = vmul.f32 %v421_v41, %v253_v43 }
 0x19a   :  { %v261_v45 = vsub.f32 %v456_v32, %v260_v44 }
 0x19c   :  { %v262_v46 = vmul.f32 0.0078125, %v261_v45 }
 0x19e   :  { %v263_v47 = vpack.c.bf16 %v262_v46, %v262_v46 }
 0x1a0   :  { %377 = vmatmul.mubr.bf16.vlgmr.msra.gmra.mxu1 %v263_v47 }
 0x260   :  { %v378_v48 = vpop.f32.mrf.mxu1 }
 0x261   :  { %385 = vst [vmem:[#allocation8] sm:$0xff] %v378_v48 }
 0x262   :  { %v380_v49 = vpop.f32.mrf.mxu1 }
 0x263   :  { %386 = vst [vmem:[#allocation8 + $0x8] sm:$0xff] %v380_v49 }
 0x264   :  { %v382_v50 = vpop.f32.mrf.mxu1 }
 0x265   :  { %582 = shalt.err (!%p579_p5)
}
 0x266   :  { %396 = dma.vmem_to_hbm [thread:$0]  %s394_s8, 256, %s650_s4, [#allocation4]   ;;  %v383_v51 = vpop.f32.mrf.mxu1 }
 0x267   :  { %595 = dma.done.wait [#allocation4], 256  }
 0x268   :  { %596 = vsyncadd [#allocation4], 4294967040 }
 0x269   :  { %400 = vsyncpa [#allocation3], 1 }
 0x26a   :  { %401 = vsyncpa [#allocation6], 1 }
 0x26b   :  { %402 = vsyncpa [#allocation4], 1 }

// kernel: tpu_custom_call.1
= control target key start
LH: loop header
LB: loop body
LE: loop exit
PB: predicated region body
PF: predicated region fallthrough
CT: control target
= control target key end

     0   :  { %9 = vsyncpa [#allocation3], 0  ;;  %s646_s0 = inlined_call_operand.hbm [shape: bf16[8,256], index: 0, kind: input, shape index: {}]   ;;  %s647_s1 = inlined_call_operand.hbm [shape: bf16[256,128], index: 1, kind: input, shape index: {}]   ;;  %s648_s2 = inlined_call_operand.hbm [shape: bf16[128,256], index: 2, kind: input, shape index: {}]   ;;  %s649_s3 = inlined_call_operand.vmem [shape: f32[1,128], index: 3, kind: input, shape index: {}]   ;;  %s650_s4 = inlined_call_operand.hbm [shape: f32[8,256], index: 4, kind: output, shape index: {}]  }
   0x1   :  { %10 = vsyncpa [#allocation6], 0 }
   0x2   :  { %11 = vsyncpa [#allocation4], 0  ;;  %s597_s15 = smov [#allocation5]  }
   0x3   :  { %s27_s16 = sshll.u32 %s597_s15, 4  ;;  %s28_s16 = int_to_ptr.vmem [resolvable:$true] %s27_s16 }
   0x4   :  { %s519_s17 = scalar_lea.vmem %s28_s16, 2048  ;;  %p524_p1 = scmp.lt.s32.totalorder %s28_s16, %s28_s16 }
   0x5   :  { %p520_p0 = scmp.ne.s32.totalorder %s28_s16, %s519_s17  ;;  %p525_p2 = scmp.lt.s32.totalorder %s519_s17, %s519_s17 }
   0x7   :  { %p526_p3 = por %p525_p2, %p524_p1 }
   0x9   :  { %p527_p4 = pnand %p526_p3, %p520_p0 }
   0xb   :  { %530 = shalt.err (!%p527_p4)
}
   0xc   :  { %s598_s18 = smov 64   ;;  %s599_s19 = smov 4  }
   0xd   :  { %33 = dma.hbm_to_vmem [thread:$0]  %s647_s1, 2048, %s28_s16, [#allocation6], %s598_s18, %s598_s18, %s599_s19  }
   0xe   :  { %s600_s22 = smov [#allocation2]   ;;  %s601_s24 = smov [#allocation7]  }
   0xf   :  { %s18_s23 = sshll.u32 %s600_s22, 4  ;;  %s39_s25 = sshll.u32 %s601_s24, 4  ;;  %s19_s23 = int_to_ptr.vmem [resolvable:$true] %s18_s23  ;;  %s40_s25 = int_to_ptr.vmem [resolvable:$true] %s39_s25 }
  0x10   :  { %s539_s26 = scalar_lea.vmem %s19_s23, 128  ;;  %p544_p6 = scmp.lt.s32.totalorder %s19_s23, %s19_s23 }
  0x11   :  { %p540_p5 = scmp.ne.s32.totalorder %s19_s23, %s539_s26  ;;  %p545_p7 = scmp.lt.s32.totalorder %s539_s26, %s539_s26 }
  0x13   :  { %p546_p8 = por %p545_p7, %p544_p6 }
  0x15   :  { %p547_p9 = pnand %p546_p8, %p540_p5 }
  0x17   :  { %550 = shalt.err (!%p547_p9)
}
  0x18   :  { %21 = dma.hbm_to_vmem [thread:$0]  %s646_s0, 128, %s19_s23, [#allocation3]  }
  0x19   :  { %s559_s29 = scalar_lea.vmem %s40_s25, 2048  ;;  %p564_p11 = scmp.lt.s32.totalorder %s40_s25, %s40_s25 }
  0x1a   :  { %p560_p10 = scmp.ne.s32.totalorder %s40_s25, %s559_s29  ;;  %p565_p12 = scmp.lt.s32.totalorder %s559_s29, %s559_s29 }
  0x1c   :  { %p566_p13 = por %p565_p12, %p564_p11 }
  0x1e   :  { %p567_p0 = pnand %p566_p13, %p560_p10 }
  0x20   :  { %570 = shalt.err (!%p567_p0)
}
  0x21   :  { %s602_s1 = smov 128   ;;  %s603_s30 = smov 8  }
  0x22   :  { %45 = dma.hbm_to_vmem [thread:$0]  %s648_s2, 2048, %s40_s25, [#allocation6], %s602_s1, %s602_s1, %s603_s30  }
  0x23   :  { %591 = dma.done.wait [#allocation3], 128  }
  0x24   :  { %592 = vsyncadd [#allocation3], 4294967168 }
  0x25   :  { %593 = dma.done.wait [#allocation6], 4096  }
  0x26   :  { %594 = vsyncadd [#allocation6], 4294963200  ;;  %v469_v0 = vld [vmem:[#allocation5 + $0x78] sm:$0xff]   ;;  %v471_v2 = vld [vmem:[#allocation5 + $0x70] sm:$0xff]   ;;  %v604_v40 = vmov 0   ;;  %s605_s7 = smov [#allocation8]  }
  0x27   :  { %v470_v1 = vld [vmem:[#allocation5 + $0x38] sm:$0xff]   ;;  %438 = vmatprep.subr.bf16.mxu0 %v469_v0  ;;  %v472_v3 = vld [vmem:[#allocation5 + $0x30] sm:$0xff]   ;;  %v473_v4 = vld [vmem:[#allocation5 + $0x68] sm:$0xff]   ;;  %376 = vmatprep.mubr.bf16.mxu1 %v604_v40  ;;  %s393_s8 = sshll.u32 %s605_s7, 4  ;;  %s394_s8 = int_to_ptr.vmem [resolvable:$true] %s393_s8 }
  0x28   :  { %439 = vmatpush3.bf16.msra.mxu0 %v470_v1  ;;  %v474_v5 = vld [vmem:[#allocation5 + $0x28] sm:$0xff]   ;;  %v475_v6 = vld [vmem:[#allocation5 + $0x60] sm:$0xff]   ;;  %v477_v8 = vld [vmem:[#allocation5 + $0x58] sm:$0xff]   ;;  %s571_s9 = scalar_lea.vmem %s394_s8, 256  ;;  %p576_p2 = scmp.lt.s32.totalorder %s394_s8, %s394_s8 }
  0x29   :  { %440 = vmatprep.subr.bf16.mxu0 %v471_v2  ;;  %v476_v7 = vld [vmem:[#allocation5 + $0x20] sm:$0xff]   ;;  %v478_v9 = vld [vmem:[#allocation5 + $0x18] sm:$0xff]   ;;  %v479_v10 = vld [vmem:[#allocation5 + $0x50] sm:$0xff]   ;;  %p572_p1 = scmp.ne.s32.totalorder %s394_s8, %s571_s9  ;;  %p577_p3 = scmp.lt.s32.totalorder %s571_s9, %s571_s9 }
  0x2a   :  { %v58_v11 = vld [vmem:[#allocation2] sm:$0xff]  ;;  %v480_v12 = vld [vmem:[#allocation5 + $0x10] sm:$0xff]   ;;  %v481_v14 = vld [vmem:[#allocation5 + $0x48] sm:$0xff]  }
  0x2b   :  { %v404_v13 = vcombine.high %v58_v11, %v58_v11  ;;  %v482_v15 = vld [vmem:[#allocation5 + $0x8] sm:$0xff]   ;;  %v483_v16 = vld [vmem:[#allocation5 + $0x40] sm:$0xff]   ;;  %v403_v18 = vcombine.low %v58_v11, %v58_v11  ;;  %v487_v19 = vld [vmem:[#allocation7 + $0x74] ss:$8 sps:$4 sm:$0xff]   ;;  %p578_p4 = por %p577_p3, %p576_p2 }
  0x2c   :  { %441 = vmatpush3.bf16.msra.mxu0 %v472_v3  ;;  %v484_v17 = vld [vmem:[#allocation5] sm:$0xff]   ;;  %v489_v20 = vld [vmem:[#allocation7 + $0x70] ss:$8 sps:$4 sm:$0xff]   ;;  %344 = vmatprep.subr.bf16.mxu1 %v487_v19  ;;  %v493_v23 = vld [vmem:[#allocation7 + $0x54] ss:$8 sps:$4 sm:$0xff]  }
  0x2d   :  { %442 = vmatprep.subr.bf16.mxu0 %v473_v4  ;;  %243 = vmatprep.mubr.bf16.mxu0 %v404_v13  ;;  %v490_v21 = vld [vmem:[#allocation7 + $0x64] ss:$8 sps:$4 sm:$0xff]   ;;  %v492_v22 = vld [vmem:[#allocation7 + $0x60] ss:$8 sps:$4 sm:$0xff]   ;;  %v495_v24 = vld [vmem:[#allocation7 + $0x50] ss:$8 sps:$4 sm:$0xff]   ;;  %p579_p5 = pnand %p578_p4, %p572_p1 }
  0x2e   :  { %345 = vmatpush1.bf16.msra.mxu1 %v489_v20  ;;  %v496_v25 = vld [vmem:[#allocation7 + $0x44] ss:$8 sps:$4 sm:$0xff]   ;;  %v498_v26 = vld [vmem:[#allocation7 + $0x40] ss:$8 sps:$4 sm:$0xff]   ;;  %v499_v27 = vld [vmem:[#allocation7 + $0x34] ss:$8 sps:$4 sm:$0xff]  }
  0x2f   :  { %346 = vmatprep.subr.bf16.mxu1 %v490_v21  ;;  %v501_v28 = vld [vmem:[#allocation7 + $0x30] ss:$8 sps:$4 sm:$0xff]   ;;  %v502_v29 = vld [vmem:[#allocation7 + $0x24] ss:$8 sps:$4 sm:$0xff]   ;;  %v504_v35 = vld [vmem:[#allocation7 + $0x20] ss:$8 sps:$4 sm:$0xff]  }
  0x30   :  { %443 = vmatpush3.bf16.msra.mxu0 %v474_v5  ;;  %v505_v36 = vld [vmem:[#allocation7 + $0x14] ss:$8 sps:$4 sm:$0xff]   ;;  %v507_v37 = vld [vmem:[#allocation7 + $0x10] ss:$8 sps:$4 sm:$0xff]   ;;  %v508_v38 = vld [vmem:[#allocation7 + $0x4] ss:$8 sps:$4 sm:$0xff]  }
  0x31   :  { %444 = vmatprep.subr.bf16.mxu0 %v475_v6  ;;  %v510_v39 = vld [vmem:[#allocation7] ss:$8 sps:$4 sm:$0xff]   ;;  %v421_v41 = vld [vmem:[%s649_s3] ss:$0 sm:$0xff] }
  0x32   :  { %347 = vmatpush1.bf16.msra.mxu1 %v492_v22 }
  0x33   :  { %348 = vmatprep.subr.bf16.mxu1 %v493_v23 }
  0x34   :  { %445 = vmatpush3.bf16.msra.mxu0 %v476_v7 }
  0x35   :  { %446 = vmatprep.subr.bf16.mxu0 %v477_v8 }
  0x36   :  { %349 = vmatpush1.bf16.msra.mxu1 %v495_v24 }
  0x37   :  { %350 = vmatprep.subr.bf16.mxu1 %v496_v25 }
  0x38   :  { %447 = vmatpush3.bf16.msra.mxu0 %v478_v9 }
  0x39   :  { %448 = vmatprep.subr.bf16.mxu0 %v479_v10 }
  0x3a   :  { %351 = vmatpush1.bf16.msra.mxu1 %v498_v26 }
  0x3b   :  { %352 = vmatprep.subr.bf16.mxu1 %v499_v27 }
  0x3c   :  { %449 = vmatpush3.bf16.msra.mxu0 %v480_v12 }
  0x3d   :  { %450 = vmatprep.subr.bf16.mxu0 %v481_v14 }
  0x3e   :  { %353 = vmatpush1.bf16.msra.mxu1 %v501_v28 }
  0x3f   :  { %354 = vmatprep.subr.bf16.mxu1 %v502_v29 }
  0x40   :  { %451 = vmatpush3.bf16.msra.mxu0 %v482_v15 }
  0x41   :  { %452 = vmatprep.subr.bf16.mxu0 %v483_v16 }
  0x42   :  { %355 = vmatpush1.bf16.msra.mxu1 %v504_v35 }
  0x43   :  { %356 = vmatprep.subr.bf16.mxu1 %v505_v36 }
  0x44   :  { %453 = vmatpush3.bf16.msra.mxu0 %v484_v17 }
  0x46   :  { %357 = vmatpush1.bf16.msra.mxu1 %v507_v37 }
  0x47   :  { %244 = vmatmul.mubr.bf16.vlgmr.msra.gmra.mxu0 %v403_v18  ;;  %358 = vmatprep.subr.bf16.mxu1 %v508_v38 }
  0x4a   :  { %359 = vmatpush1.bf16.msra.mxu1 %v510_v39 }
 0x107   :  { %v454_v30 = vpop.f32.mrf.mxu0 }
 0x109   :  { %v455_v31 = vpop.f32.mrf.mxu0 }
 0x10a   :  { %v456_v32 = vadd.f32 %v455_v31, %v454_v30 }
 0x10b   :  { %v457_v33 = vpop.f32.mrf.mxu0 }
 0x10c   :  { %251 = vadd.xlane.f32.xlu0 %v456_v32 }
 0x10d   :  { %v458_v34 = vpop.f32.mrf.mxu0 }
 0x195   :  { %v252_v42 = vpop.xlane.xlu0 %251 }
 0x196   :  { %v253_v43 = vmul.f32 0.0078125, %v252_v42 }
 0x198   :  { %v260_v44 = vmul.f32 %v421_v41, %v253_v43 }
 0x19a   :  { %v261_v45 = vsub.f32 %v456_v32, %v260_v44 }
 0x19c   :  { %v262_v46 = vmul.f32 0.0078125, %v261_v45 }
 0x19e   :  { %v263_v47 = vpack.c.bf16 %v262_v46, %v262_v46 }
 0x1a0   :  { %377 = vmatmul.mubr.bf16.vlgmr.msra.gmra.mxu1 %v263_v47 }
 0x260   :  { %v378_v48 = vpop.f32.mrf.mxu1 }
 0x261   :  { %385 = vst [vmem:[#allocation8] sm:$0xff] %v378_v48 }
 0x262   :  { %v380_v49 = vpop.f32.mrf.mxu1 }
 0x263   :  { %386 = vst [vmem:[#allocation8 + $0x8] sm:$0xff] %v380_v49 }
 0x264   :  { %v382_v50 = vpop.f32.mrf.mxu1 }
 0x265   :  { %582 = shalt.err (!%p579_p5)
}
 0x266   :  { %396 = dma.vmem_to_hbm [thread:$0]  %s394_s8, 256, %s650_s4, [#allocation4]   ;;  %v383_v51 = vpop.f32.mrf.mxu1 }
 0x267   :  { %595 = dma.done.wait [#allocation4], 256  }
 0x268   :  { %596 = vsyncadd [#allocation4], 4294967040 }
 0x269   :  { %400 = vsyncpa [#allocation3], 1 }
 0x26a   :  { %401 = vsyncpa [#allocation6], 1 }
 0x26b   :  { %402 = vsyncpa [#allocation4], 1 }

</bundles_post_ra>
